<compile_context>
chip_gen: v6e
topology: v6e:2x2x1
jax: 0.10.0
libtpu: 0.0.40
codegen_flags: <defaults>
</compile_context>

<pallas_src>
from math import pi, sqrt

import jax
import jax.numpy as jnp
from jax.experimental import pallas as pl
from jax.experimental.pallas import tpu as pltpu


def _round_up(x, m):
    return ((x + m - 1) // m) * m


def _fastmmd_kernel(x_ref, s_ref, w_ref, out_ref, acc_ref):
    i = pl.program_id(1)

    @pl.when(i == 0)
    def _init():
        acc_ref[...] = jnp.zeros_like(acc_ref)

    # Single bf16 MXU pass; the trailing ones-column of x selects the (pre-scaled) bias row
    # of w, so t = sqrt(2/gamma) * (x @ w_rand + b_rand) for the real rows/columns.
    t = jnp.dot(x_ref[...], w_ref[...], preferred_element_type=jnp.float32)   # (TB, TM) f32
    # Signed row weights (+1/Na for a-rows, -1/Nb for b-rows, 0 for padding rows) fold the
    # two group means and their subtraction into one accumulation.
    contrib = jnp.cos(t) * s_ref[...]                                         # (TB, TM) f32

    tb, tm = contrib.shape
    # vreg-aligned partial sums: collapse groups of 8 rows with pure VPU adds; the
    # cross-sublane (XLU) reduce happens exactly once, in the finalize branch below.
    acc_ref[...] += jnp.sum(contrib.reshape(tb // 8, 8, tm), axis=0)

    @pl.when(i == pl.num_programs(1) - 1)
    def _finalize():
        # (1, TM) slice of mean(phi_a) - mean(phi_b), still missing the sqrt(2/M) factor
        # (applied in the wrapper together with the norm).
        out_ref[...] = jnp.sum(acc_ref[...], axis=0, keepdims=True)


def fast_mmd(a, b, w_rand, b_rand, gamma, *, tile_rows=None, tile_m=None):
    """Pallas equivalent of FastMMD.forward(a, b) with w_rand/b_rand supplied."""
    Na, D = a.shape
    Nb, Db = b.shape
    assert D == Db
    assert Na > 0 and Nb > 0, "FastMMD needs at least one row in each group"
    M = w_rand.shape[1]

    scale_a = sqrt(2.0 / M)        # applied to the final norm in the wrapper
    scale_b = sqrt(2.0 / gamma)    # folded into the weight/bias slab below

    # Geometry: data columns + 1 "ones" column (bias fused into the matmul).  The K dim is
    # only rounded to the bf16 sublane quantum, NOT to 128; out_features stays lane-padded.
    D_ext = _round_up(D + 1, 16)
    M_p = _round_up(M, 128)

    R = Na + Nb
    if tile_rows is None:
        TB = 1024 if R >= 1024 else _round_up(R, 16)
    else:
        TB = max(16, _round_up(tile_rows, 16))
    TB = min(TB, _round_up(R, 16))
    R_p = _round_up(R, TB)

    if tile_m is None:
        TM = M_p            # single m-tile; set tile_m < M on v7x to use both TensorCores
    else:
        TM = min(_round_up(tile_m, 128), M_p)
        while M_p % TM != 0:
            TM += 128

    f32, bf16 = jnp.float32, jnp.bfloat16

    # Packed bf16 activation slab [a ; b] with a trailing ones column; padding is zero.
    xab = jnp.zeros((R_p, D_ext), bf16)
    xab = xab.at[:Na, :D].set(a.astype(bf16))
    xab = xab.at[Na:R, :D].set(b.astype(bf16))
    xab = xab.at[:R, D].set(1.0)

    # Signed per-row weight column (kept in f32 for exact group means).
    srow = jnp.zeros((R_p, 1), f32)
    srow = srow.at[:Na, 0].set(1.0 / Na)
    srow = srow.at[Na:R, 0].set(-1.0 / Nb)

    # Packed bf16 weight slab with sqrt(2/gamma) pre-folded; bias row sits at row D
    # (driven by the ones column of xab).
    wext = jnp.zeros((D_ext, M_p), bf16)
    wext = wext.at[:D, :M].set((w_rand * scale_b).astype(bf16))
    wext = wext.at[D, :M].set((b_rand * scale_b).astype(bf16))

    grid = (M_p // TM, R_p // TB)
    out = pl.pallas_call(
        _fastmmd_kernel,
        grid=grid,
        in_specs=[
            pl.BlockSpec((TB, D_ext), lambda m, i: (i, 0)),   # batch-tiled activations
            pl.BlockSpec((TB, 1), lambda m, i: (i, 0)),       # signed row weights
            # TODO(synk): pl.Buffered(1) on this loop-invariant spec would halve its VMEM
            # footprint for very large D*M (matters on v7x's 64 MiB VMEM); default kept here.
            pl.BlockSpec((D_ext, TM), lambda m, i: (0, m)),   # resident / m-tiled weights
        ],
        out_specs=pl.BlockSpec((1, TM), lambda m, i: (0, m)),
        out_shape=jax.ShapeDtypeStruct((1, M_p), jnp.float32),
        scratch_shapes=[pltpu.VMEM((8, TM), jnp.float32)],    # vreg-aligned running sums
        compiler_params=pltpu.CompilerParams(
            # Rows are a pure reduction (accumulator), so they are the last/"arbitrary"
            # axis; the m axis is independent ("parallel": megacore split on v7x when
            # tile_m < M_p).  VMEM needs are tiny at these tile sizes; raise
            # vmem_limit_bytes here only for very large D*M.
            dimension_semantics=("parallel", "arbitrary"),
        ),
    )(xab, srow, wext)

    d = out[0, :M]                               # drop padded lanes exactly
    return scale_a * jnp.sqrt(jnp.sum(d * d))


def fast_mmd_ref(a, b, w_rand, b_rand, gamma):
    """Pure-JAX full-f32 reference mirroring the PyTorch FastMMD.forward."""
    M = w_rand.shape[1]
    sa = sqrt(2.0 / M)
    sb = sqrt(2.0 / gamma)
    hp = jax.lax.Precision.HIGHEST
    phi_a = sa * jnp.cos(sb * (jnp.dot(a, w_rand, precision=hp) + b_rand))
    phi_b = sa * jnp.cos(sb * (jnp.dot(b, w_rand, precision=hp) + b_rand))
    d = phi_a.mean(axis=0) - phi_b.mean(axis=0)
    return jnp.sqrt(jnp.sum(d * d))


def fast_mmd_ref_bf16(a, b, w_rand, b_rand, gamma):
    """Reference with the kernel's bf16 operand quantization (f32 accumulate / cos)."""
    M = w_rand.shape[1]
    sa = sqrt(2.0 / M)
    sb = sqrt(2.0 / gamma)
    hp = jax.lax.Precision.HIGHEST
    q = lambda x: x.astype(jnp.bfloat16).astype(jnp.float32)
    w_s, b_s = q(w_rand * sb), q(b_rand * sb)
    phi_a = jnp.cos(jnp.dot(q(a), w_s, precision=hp) + b_s)
    phi_b = jnp.cos(jnp.dot(q(b), w_s, precision=hp) + b_s)
    d = phi_a.mean(axis=0) - phi_b.mean(axis=0)
    return sa * jnp.sqrt(jnp.sum(d * d))


if __name__ == "__main__":
    key = jax.random.PRNGKey(0)
    Na, Nb, D, M = 20, 20, 16, 64          # two small "protected / non-protected" groups
    gamma = 1.0

    ka, kb, kw, kbr = jax.random.split(key, 4)
    a = jax.random.normal(ka, (Na, D), jnp.float32)
    b = jax.random.normal(kb, (Nb, D), jnp.float32) + 0.5
    w_rand = jax.random.normal(kw, (D, M), jnp.float32)                  # torch.randn
    b_rand = jax.random.uniform(kbr, (M,), jnp.float32, 0.0, 2.0 * pi)   # uniform_(0, 2*pi)

    # tile_rows=16 -> 3 grid steps over the 40 stacked rows, exercising the accumulator path
    # (the a/b boundary falls mid-tile and is handled by the signed row weights).
    mmd = fast_mmd(a, b, w_rand, b_rand, gamma, tile_rows=16)
    mmd = jax.block_until_ready(mmd)

    ref_q = fast_mmd_ref_bf16(a, b, w_rand, b_rand, gamma)  # same operand quantization
    ref = fast_mmd_ref(a, b, w_rand, b_rand, gamma)         # full-precision reference

    assert mmd.shape == ()
    assert bool(jnp.isfinite(mmd))
    assert bool(jnp.allclose(mmd, ref_q, rtol=2e-3, atol=1e-4)), (float(mmd), float(ref_q))
    assert bool(jnp.allclose(mmd, ref, rtol=5e-2, atol=5e-3)), (float(mmd), float(ref))
    print("KERNEL_OK")
</pallas_src>

<mosaic_0001>
module attributes {stable_mosaic.version = 11 : i64} {
  func.func @_fastmmd_kernel(%arg0: i32, %arg1: i32, %arg2: memref<16x32xbf16, #tpu.memory_space<vmem>>, %arg3: memref<16x1xf32, #tpu.memory_space<vmem>>, %arg4: memref<32x128xbf16, #tpu.memory_space<vmem>>, %arg5: memref<1x128xf32, #tpu.memory_space<vmem>>, %arg6: memref<8x128xf32, #tpu.memory_space<vmem>>) attributes {dimension_semantics = [#tpu.dimension_semantics<parallel>, #tpu.dimension_semantics<arbitrary>], iteration_bounds = array<i64: 1, 3>, scalar_prefetch = 0 : i64, scratch_operands = 1 : i64, tpu.core_type = #tpu.core_type<tc>, window_params = [{transform_indices = @transform_0, window_bounds = array<i64: 16, 32>}, {transform_indices = @transform_1, window_bounds = array<i64: 16, 1>}, {transform_indices = @transform_2, window_bounds = array<i64: 32, 128>}, {transform_indices = @transform_3, window_bounds = array<i64: 1, 128>}]} {
    %c0_i32 = arith.constant 0 : i32
    %0 = arith.cmpi eq, %arg1, %c0_i32 : i32
    %1 = arith.extui %0 : i1 to i32
    %c0_i32_0 = arith.constant 0 : i32
    %2 = arith.cmpi ne, %1, %c0_i32_0 : i32
    scf.if %2 {
      %cst_12 = arith.constant 0.000000e+00 : f32
      %18 = vector.broadcast %cst_12 : f32 to vector<8x128xf32>
      %c0_13 = arith.constant 0 : index
      %c0_14 = arith.constant 0 : index
      %19 = vector.load %arg6[%c0_13, %c0_14] : memref<8x128xf32, #tpu.memory_space<vmem>>, vector<8x128xf32>
      tpu.vector_store %arg6[%c0_13, %c0_14], %18 {strides = array<i32>} : memref<8x128xf32, #tpu.memory_space<vmem>>, vector<8x128xf32>,
    } else {
    }
    %c0 = arith.constant 0 : index
    %c0_1 = arith.constant 0 : index
    %3 = vector.load %arg2[%c0, %c0_1] : memref<16x32xbf16, #tpu.memory_space<vmem>>, vector<16x32xbf16>
    %c0_2 = arith.constant 0 : index
    %c0_3 = arith.constant 0 : index
    %4 = vector.load %arg4[%c0_2, %c0_3] : memref<32x128xbf16, #tpu.memory_space<vmem>>, vector<32x128xbf16>
    %cst = arith.constant dense<0.000000e+00> : vector<16x128xf32>
    %5 = tpu.matmul %3, %4, %cst {dimension_numbers = #tpu.dot_dimension_numbers<[1], [0], [0], [1], [0, 0, 1, 1], [], []>} : vector<16x32xbf16>, vector<32x128xbf16>, vector<16x128xf32> -> vector<16x128xf32>
    %6 = math.cos %5 : vector<16x128xf32>
    %c0_4 = arith.constant 0 : index
    %c0_5 = arith.constant 0 : index
    %7 = vector.load %arg3[%c0_4, %c0_5] : memref<16x1xf32, #tpu.memory_space<vmem>>, vector<16x1xf32>
    %8 = vector.broadcast %7 : vector<16x1xf32> to vector<16x128xf32>
    %9 = arith.mulf %6, %8 : vector<16x128xf32>
    %c0_6 = arith.constant 0 : index
    %c0_7 = arith.constant 0 : index
    %10 = vector.load %arg6[%c0_6, %c0_7] : memref<8x128xf32, #tpu.memory_space<vmem>>, vector<8x128xf32>
    %11 = vector.shape_cast %9 : vector<16x128xf32> to vector<2x8x128xf32>
    %cst_8 = arith.constant dense<0.000000e+00> : vector<8x128xf32>
    %12 = vector.multi_reduction <add>, %11, %cst_8 [0] : vector<2x8x128xf32> to vector<8x128xf32>
    %13 = arith.addf %10, %12 : vector<8x128xf32>
    %c0_9 = arith.constant 0 : index
    %c0_10 = arith.constant 0 : index
    %14 = vector.load %arg6[%c0_9, %c0_10] : memref<8x128xf32, #tpu.memory_space<vmem>>, vector<8x128xf32>
    tpu.vector_store %arg6[%c0_9, %c0_10], %13 {strides = array<i32>} : memref<8x128xf32, #tpu.memory_space<vmem>>, vector<8x128xf32>,
    %c2_i32 = arith.constant 2 : i32
    %15 = arith.cmpi eq, %arg1, %c2_i32 : i32
    %16 = arith.extui %15 : i1 to i32
    %c0_i32_11 = arith.constant 0 : i32
    %17 = arith.cmpi ne, %16, %c0_i32_11 : i32
    scf.if %17 {
      %c0_12 = arith.constant 0 : index
      %c0_13 = arith.constant 0 : index
      %18 = vector.load %arg6[%c0_12, %c0_13] : memref<8x128xf32, #tpu.memory_space<vmem>>, vector<8x128xf32>
      %cst_14 = arith.constant dense<0.000000e+00> : vector<128xf32>
      %19 = vector.multi_reduction <add>, %18, %cst_14 [0] : vector<8x128xf32> to vector<128xf32>
      %20 = vector.shape_cast %19 : vector<128xf32> to vector<1x128xf32>
      %c0_15 = arith.constant 0 : index
      %c0_16 = arith.constant 0 : index
      %21 = vector.load %arg5[%c0_15, %c0_16] : memref<1x128xf32, #tpu.memory_space<vmem>>, vector<1x128xf32>
      tpu.vector_store %arg5[%c0_15, %c0_16], %20 {strides = array<i32>} : memref<1x128xf32, #tpu.memory_space<vmem>>, vector<1x128xf32>,
    } else {
    }
    return
  }
  func.func @transform_0(%arg0: i32, %arg1: i32) -> (i32, i32) {
    %c0_i32 = arith.constant 0 : i32
    %c0_i32_0 = arith.constant 0 : i32
    return %arg1, %c0_i32 : i32, i32
  }
  func.func @transform_1(%arg0: i32, %arg1: i32) -> (i32, i32) {
    %c0_i32 = arith.constant 0 : i32
    %c0_i32_0 = arith.constant 0 : i32
    return %arg1, %c0_i32 : i32, i32
  }
  func.func @transform_2(%arg0: i32, %arg1: i32) -> (i32, i32) {
    %c0_i32 = arith.constant 0 : i32
    %c0_i32_0 = arith.constant 0 : i32
    return %c0_i32, %arg0 : i32, i32
  }
  func.func @transform_3(%arg0: i32, %arg1: i32) -> (i32, i32) {
    %c0_i32 = arith.constant 0 : i32
    %c0_i32_0 = arith.constant 0 : i32
    return %c0_i32, %arg0 : i32, i32
  }
}

</mosaic_0001>

<bundles_post_ra>
// kernel: tpu_custom_call.1
= control target key start
LH: loop header
LB: loop body
LE: loop exit
PB: predicated region body
PF: predicated region fallthrough
CT: control target
= control target key end

     0   :  { %8 = vsyncpa [#allocation4], 0  ;;  %s793_s12 = smov 0   ;;  %s795_s13 = smov 0   ;;  %s940_s0 = inlined_call_operand.vmem [shape: bf16[48,32], index: 0, kind: input, shape index: {}]   ;;  %s941_s1 = inlined_call_operand.vmem [shape: f32[48,1], index: 1, kind: input, shape index: {}]   ;;  %s942_s2 = inlined_call_operand.vmem [shape: bf16[32,128], index: 2, kind: input, shape index: {}]   ;;  %s943_s3 = inlined_call_operand.hbm [shape: f32[1,128], index: 3, kind: output, shape index: {}]  }
   0x1   :  { %s797_s14 = smov 0  }
   0x2 LB: > { %s611_s15 = sadd.s32 4294967295, %s760_s14   ;;  %s23_s16 = sadd.s32 1, %s756_s13  ;;  %s760_s14 = sphi %s797_s14, %s14_s14   ;;  %s756_s13 = sphi %s795_s13, %s950_s13   ;;  %s752_s12 = sphi %s793_s12, %s949_s12  }
   0x3   : > { %p24_p0 = scmp.ge.s32.totalorder %s23_s16, 3  ;;  %p615_p1 = scmp.ge.s32.totalorder %s760_s14, 1 }
   0x4   : > { %p171_p2 = scmp.lt.s32.totalorder %s760_s14, 4 }
   0x5   : > { %s952_s16 = smov (%p24_p0, %s23_s16), 0 }
   0x6   : > { %p172_p3 = pnand %p615_p1, %p171_p2 }
   0x7   : > { %s616_s17 = sshll.u32 (!%p172_p3), %s752_s12, 1  ;;  %p620_p5 = scmp.ne.s32.totalorder (!%p172_p3), %s752_s12, 0 }
   0x8   : > { %175 = sbr.rel (%p172_p3) target bundleno = 357 (0x165), region = 32  ;;  %p200_p4 = scmp.lt.s32.totalorder (!%p172_p3), %s616_s17, 5 }
   0xd   : > { %s954_s17 = smov (!%p200_p4, %s616_s17), 5  ;;  %219 = sbr.rel (%p620_p5) target bundleno = 20 (0x14), region = 36 }
   0xe   : > { %s617_s18 = sshll.u32 %s954_s17, 2  ;;  %s619_s19 = sshll.u32 %s954_s17, 3 }
   0xf   : > { %s203_s22 = scalar_lea.vmem %s940_s0, %s617_s18  ;;  %s209_s25 = scalar_lea.vmem %s941_s1, %s619_s19 }
  0x12   : > { %v762_v0 = vmov 0.0  }
  0x13   : > { %220 = vst [vmem:[#allocation2] sm:$0xff] %v762_v0 }
  0x14 PF: > { %v699_v1 = vld [vmem:[%s942_s2 + $0x8] sm:$0xff]   ;;  %v763_v2 = vmov 0.0   ;;  %v700_v3 = vld [vmem:[%s942_s2] sm:$0xff]   ;;  %vm764_vm0 = vmmov 0   ;;  %v765_v5 = vmov 0   ;;  %vm244_vm1 = vcmask 261120  }
  0x15   : > { %641 = vmatprep.subr.bf16.mxu0 %v763_v2  ;;  %645 = vmatprep.mubr.msk.bf16.mxu0 %vm764_vm0, %v763_v2  ;;  %v495_v4 = vld [vmem:[%s209_s25] sm:$0xff]  ;;  %v496_v7 = vld [vmem:[%s209_s25 + $0x8] sm:$0xff]  ;;  %v766_v28 = vmov 683565275   ;;  %v767_v32 = vmov 2475754826  }
  0x16   : > { %642 = vmatpush3.bf16.msra.mxu0 %v699_v1  ;;  %698 = vset.pattern.permute.xlu0 %v765_v5  ;;  %v701_v6 = vld [vmem:[%s203_s22] sm:$0xff]   ;;  %v768_v34 = vmov 2131351028   ;;  %v769_v36 = vmov 2102212464   ;;  %p633_p6 = scmp.ne.s32.totalorder %s752_s12, 2 }
  0x17   : > { %643 = vmatprep.subr.bf16.mxu0 %v763_v2  ;;  %499 = vperm.xlu0 %698, %v495_v4   ;;  %v770_v38 = vmov 920167782   ;;  %v771_v45 = vmov 1326507024  }
  0x1a   : > { %644 = vmatpush3.bf16.msra.mxu0 %v700_v3 }
  0x1b   : > { %504 = vperm.xlu0 %698, %v496_v7  }
  0x1d   : > { %646 = vmatmul.mubr.msk.bf16.vlgmr.msra.gmra.mxu0 %vm244_vm1, %v701_v6 }
  0xdd   : > { %v828_v8 = vpop.f32.mrf.mxu0 }
  0xde   : > { %v289_v9 = vand.u32 2147483647, %v828_v8  ;;  %v292_v10 = vand.u32 2139095040, %v828_v8  ;;  %vm291_vm0 = vcmp.lt.s32.totalorder %v828_v8, 0 }
  0xdf   : > { %v647_v11 = vpop.f32.mrf.mxu0 }
  0xe0   : > { %v293_v12 = vshrl.u32 %v292_v10, 23  ;;  %v296_v13 = vand.u32 8388607, %v289_v9  ;;  %vm884_vm1 = vcmp.le.f32.partialorder %v289_v9, 0.7853982 }
  0xe1   : > { %v834_v14 = vpop.f32.mrf.mxu0 }
  0xe2   : > { %v625_v15 = vadd.s32 4294967169, %v293_v12  ;;  %v395_v16 = vand.u32 2139095040, %v834_v14  ;;  %v297_v19 = vor.u32 8388608, %v296_v13  ;;  %v392_v21 = vand.u32 2147483647, %v834_v14 }
  0xe3   : > { %v648_v17 = vpop.f32.mrf.mxu0 }
  0xe4   : > { %v299_v18 = vadd.s32 1, %v625_v15  ;;  %v396_v20 = vshrl.u32 %v395_v16, 23  ;;  %v838_v26 = vshll.u32 %v297_v19, 8  ;;  %v399_v30 = vand.u32 8388607, %v392_v21 }
  0xe6   : > { %vm300_vm2 = vcmp.gt.s32.totalorder %v299_v18, 0  ;;  %v629_v23 = vadd.s32 4294967169, %v396_v20  ;;  %v400_v60 = vor.u32 8388608, %v399_v30 }
  0xe7   : > { %v301_v22 = vsel %vm300_vm2, %v299_v18, 0  ;;  %vm394_vm2 = vcmp.lt.s32.totalorder %v834_v14, 0 }
  0xe8   : > { %v302_v24 = vshrl.u32 %v301_v22, 5  ;;  %v303_v25 = vand.u32 31, %v301_v22  ;;  %v402_v31 = vadd.s32 1, %v629_v23  ;;  %v440_v11 = vshll.u32 %v400_v60, 8 }
  0xea   : > { %v304_v27 = vsub.s32 32, %v303_v25  ;;  %v306_v29 = vshll.u32 %v766_v28, %v303_v25  ;;  %v309_v33 = vshll.u32 %v767_v32, %v303_v25  ;;  %v312_v35 = vshll.u32 %v768_v34, %v303_v25 }
  0xeb   : > { %v315_v37 = vshll.u32 %v769_v36, %v303_v25  ;;  %v318_v39 = vshll.u32 %v770_v38, %v303_v25  ;;  %vm321_vm3 = vcmp.lt.s32.totalorder %v302_v24, 1  ;;  %vm323_vm4 = vcmp.lt.s32.totalorder %v302_v24, 3 }
  0xec   : > { %v307_v40 = vshrl.u32 %v767_v32, %v304_v27  ;;  %v310_v41 = vshrl.u32 %v768_v34, %v304_v27  ;;  %v313_v42 = vshrl.u32 %v769_v36, %v304_v27  ;;  %v305_v43 = vshrl.u32 %v766_v28, %v304_v27 }
  0xed   : > { %v316_v44 = vshrl.u32 %v770_v38, %v304_v27  ;;  %v319_v46 = vshrl.u32 %v771_v45, %v304_v27  ;;  %vm403_vm5 = vcmp.gt.s32.totalorder %v402_v31, 0  ;;  %vm324_vm6 = vcmp.lt.s32.totalorder %v302_v24, 4 }
  0xee   : > { %v308_v47 = vor.u32 %v307_v40, %v306_v29  ;;  %v311_v48 = vor.u32 %v310_v41, %v309_v33  ;;  %v314_v49 = vor.u32 %v313_v42, %v312_v35  ;;  %v404_v52 = vsel %vm403_vm5, %v402_v31, 0 }
  0xef   : > { %v317_v50 = vor.u32 %v316_v44, %v315_v37  ;;  %v320_v51 = vor.u32 %v319_v46, %v318_v39  ;;  %vm322_vm7 = vcmp.lt.s32.totalorder %v302_v24, 2  ;;  %v406_v63 = vand.u32 31, %v404_v52 }
  0xf0   : > { %v325_v53 = vsel %vm321_vm3, %v305_v43, %v308_v47  ;;  %v326_v54 = vsel %vm324_vm6, %v314_v49, 2102212464  ;;  %v329_v55 = vsel %vm321_vm3, %v308_v47, %v311_v48  ;;  %v333_v56 = vsel %vm321_vm3, %v311_v48, %v314_v49 }
  0xf1   : > { %v327_v57 = vsel %vm323_vm4, %v311_v48, %v326_v54  ;;  %v330_v58 = vsel %vm324_vm6, %v317_v50, 920167782  ;;  %v334_v59 = vsel %vm324_vm6, %v320_v51, 1326507024  ;;  %v405_v7 = vshrl.u32 %v404_v52, 5 }
  0xf2   : > { %v331_v61 = vsel %vm323_vm4, %v314_v49, %v330_v58  ;;  %v335_v62 = vsel %vm323_vm4, %v317_v50, %v334_v59  ;;  %v328_v0 = vsel %vm322_vm7, %v325_v53, %v327_v57  ;;  %v407_v10 = vsub.s32 32, %v406_v63 }
  0xf3   : > { %v332_v1 = vsel %vm322_vm7, %v329_v55, %v331_v61  ;;  %v336_v2 = vsel %vm322_vm7, %v333_v56, %v335_v62  ;;  %v344_v12 = vmul.u32 %v838_v26, %v328_v0  ;;  %v409_v13 = vshll.u32 %v766_v28, %v406_v63 }
  0xf4   : > { %v851_v3 = vmul.u32.u64.low %v838_v26, %v336_v2  ;;  %v852_v4 = vmul.u32.u64.high %v838_v26, %v336_v2, %v851_v3  ;;  %v855_v5 = vmul.u32.u64.low %v838_v26, %v332_v1  ;;  %v856_v6 = vmul.u32.u64.high %v838_v26, %v332_v1, %v855_v5 }
  0xf5   : > { %v412_v15 = vshll.u32 %v767_v32, %v406_v63  ;;  %v415_v16 = vshll.u32 %v768_v34, %v406_v63  ;;  %v410_v17 = vshrl.u32 %v767_v32, %v407_v10  ;;  %v413_v18 = vshrl.u32 %v768_v34, %v407_v10 }
  0xf6   : > { %v416_v19 = vshrl.u32 %v769_v36, %v407_v10  ;;  %v418_v20 = vshll.u32 %v769_v36, %v406_v63  ;;  %vm346_vm8 = vc.u32 %v852_v4, %v855_v5  ;;  %v347_v22 = vadd.s32 1, %v856_v6 }
  0xf7   : > { %v419_v23 = vshrl.u32 %v770_v38, %v407_v10  ;;  %v421_v24 = vshll.u32 %v770_v38, %v406_v63  ;;  %v411_v25 = vor.u32 %v410_v17, %v409_v13  ;;  %v414_v27 = vor.u32 %v413_v18, %v412_v15 }
  0xf8   : > { %v417_v29 = vor.u32 %v416_v19, %v415_v16  ;;  %v422_v30 = vshrl.u32 %v771_v45, %v407_v10  ;;  %v348_v26 = vsel %vm346_vm8, %v347_v22, %v856_v6  ;;  %vm424_vm9 = vcmp.lt.s32.totalorder %v405_v7, 1 }
  0xf9   : > { %v420_v31 = vor.u32 %v419_v23, %v418_v20  ;;  %vm427_vm10 = vcmp.lt.s32.totalorder %v405_v7, 4  ;;  %v349_v32 = vadd.s32 %v348_v26, %v344_v12  ;;  %vm426_vm11 = vcmp.lt.s32.totalorder %v405_v7, 3 }
  0xfa   : > { %v423_v33 = vor.u32 %v422_v30, %v421_v24  ;;  %v429_v34 = vsel %vm427_vm10, %v417_v29, 2102212464  ;;  %v408_v35 = vshrl.u32 %v766_v28, %v407_v10  ;;  %v432_v36 = vsel %vm424_vm9, %v411_v25, %v414_v27 }
  0xfb   : > { %v433_v37 = vsel %vm427_vm10, %v420_v31, 920167782  ;;  %v436_v39 = vsel %vm424_vm9, %v414_v27, %v417_v29  ;;  %v350_v40 = vadd.s32 536870912, %v349_v32  ;;  %vm425_vm12 = vcmp.lt.s32.totalorder %v405_v7, 2 }
  0xfc   : > { %v434_v38 = vsel %vm426_vm11, %v417_v29, %v433_v37  ;;  %v437_v41 = vsel %vm427_vm10, %v423_v33, 1326507024  ;;  %v428_v42 = vsel %vm424_vm9, %v408_v35, %v411_v25  ;;  %v430_v43 = vsel %vm426_vm11, %v414_v27, %v429_v34 }
  0xfd   : > { %v435_v44 = vsel %vm425_vm12, %v432_v36, %v434_v38  ;;  %v438_v45 = vsel %vm426_vm11, %v420_v31, %v437_v41  ;;  %v866_v46 = vshrl.u32 %v350_v40, 30  ;;  %v431_v52 = vsel %vm425_vm12, %v428_v42, %v430_v43 }
  0xfe   : > { %v439_v47 = vsel %vm425_vm12, %v436_v39, %v438_v45  ;;  %v868_v48 = vmul.u32.u64.low %v440_v11, %v435_v44  ;;  %v869_v49 = vmul.u32.u64.high %v440_v11, %v435_v44, %v868_v48  ;;  %v447_v55 = vmul.u32 %v440_v11, %v431_v52 }
  0xff   : > { %v871_v50 = vmul.u32.u64.low %v440_v11, %v439_v47  ;;  %v872_v51 = vmul.u32.u64.high %v440_v11, %v439_v47, %v871_v50  ;;  %v352_v28 = vshll.u32 %v866_v46, 30  ;;  %v345_v3 = vadd.s32 %v855_v5, %v852_v4 }
 0x100   : > { %v450_v54 = vadd.s32 1, %v869_v49  ;;  %v375_v9 = vsub.s32 4, %v866_v46  ;;  %vm897_vm3 = vcmp.le.f32.partialorder %v392_v21, 0.7853982  ;;  %vm381_vm8 = vweird.f32 %v828_v8 }
 0x101   : > { %v353_v53 = vsub.s32 %v349_v32, %v352_v28  ;;  %vm449_vm13 = vc.u32 %v872_v51, %v868_v48  ;;  %v448_v27 = vadd.s32 %v868_v48, %v872_v51  ;;  %vm484_vm11 = vweird.f32 %v834_v14 }
 0x102   : > { %v451_v57 = vsel %vm449_vm13, %v450_v54, %v869_v49  ;;  %v376_v45 = vsel %vm291_vm0, %v375_v9, %v866_v46 }
 0x103   : > { %v355_v56 = vsub.s32 0, %v353_v53  ;;  %v452_v58 = vadd.s32 %v451_v57, %v447_v55  ;;  %v378_v49 = vsel %vm884_vm1, 0, %v376_v45  ;;  %v500_v57 = vpop.permute.xlu0 %499 }
 0x104   : > { %v382_v51 = vand.u32 3, %v378_v49 }
 0x105   : > { %v626_v59 = vmin.u32 %v355_v56, %v353_v53  ;;  %v453_v60 = vadd.s32 536870912, %v452_v58 }
 0x106   : > { %vm384_vm4 = vcmp.eq.s32.totalorder %v382_v51, 0  ;;  %vm387_vm5 = vcmp.eq.s32.totalorder %v382_v51, 2  ;;  %vm383_vm6 = vcmp.lt.s32.totalorder %v382_v51, 2 }
 0x107   : > { %v357_v61 = vclz %v626_v59  ;;  %v454_v62 = vshrl.u32 %v453_v60, 30 }
 0x109   : > { %v627_v63 = vadd.s32 4294967294, %v357_v61  ;;  %v455_v0 = vshll.u32 %v454_v62, 30  ;;  %v478_v47 = vsub.s32 4, %v454_v62 }
 0x10b   : > { %vm628_vm14 = vcmp.lt.s32.totalorder %v627_v63, 0  ;;  %v456_v2 = vsub.s32 %v452_v58, %v455_v0  ;;  %v479_v50 = vsel %vm394_vm2, %v478_v47, %v454_v62 }
 0x10c   : > { %v360_v1 = vsel %vm628_vm14, 0, %v627_v63 }
 0x10d   : > { %v361_v6 = vsub.s32 32, %v360_v1  ;;  %v365_v7 = vsub.s32 4294967266, %v360_v1  ;;  %v458_v10 = vsub.s32 0, %v456_v2  ;;  %v362_v11 = vshll.u32 %v353_v53, %v360_v1 }
 0x10e   : > { %v481_v53 = vsel %vm897_vm3, 0, %v479_v50 }
 0x10f   : > { %v363_v12 = vshrl.u32 %v345_v3, %v361_v6  ;;  %v366_v13 = vadd.s32 127, %v365_v7  ;;  %v630_v15 = vmin.u32 %v458_v10, %v456_v2  ;;  %v485_v56 = vand.u32 3, %v481_v53  ;;  %v509_v10 = vld [vmem:[#allocation2] sm:$0xff] }
 0x111   : > { %v364_v16 = vor.u32 %v363_v12, %v362_v11  ;;  %v367_v17 = vshll.u32 %v366_v13, 23  ;;  %v460_v18 = vclz %v630_v15  ;;  %vm490_vm7 = vcmp.eq.s32.totalorder %v485_v56, 2 }
 0x112   : > { %vm487_vm9 = vcmp.eq.s32.totalorder %v485_v56, 0  ;;  %vm486_vm10 = vcmp.lt.s32.totalorder %v485_v56, 2 }
 0x113   : > { %v368_v19 = vor.u32 4788187, %v367_v17  ;;  %v631_v20 = vadd.s32 4294967294, %v460_v18  ;;  %v371_v23 = vcvt.s32.f32 %v364_v16 }
 0x115   : > { %v369_v22 = vand.u32 2147483647, %v368_v19  ;;  %vm632_vm15 = vcmp.lt.s32.totalorder %v631_v20, 0 }
 0x116   : > { %v463_v25 = vsel %vm632_vm15, 0, %v631_v20 }
 0x117   : > { %v372_v24 = vmul.f32 %v371_v23, %v369_v22  ;;  %v464_v4 = vsub.s32 32, %v463_v25  ;;  %v468_v5 = vsub.s32 4294967266, %v463_v25  ;;  %v465_v30 = vshll.u32 %v456_v2, %v463_v25  ;;  %v505_v2 = vpop.permute.xlu0 %504 }
 0x119   : > { %v373_v29 = vxor.u32 2147483648, %v372_v24  ;;  %v466_v26 = vshrl.u32 %v448_v27, %v464_v4  ;;  %v469_v31 = vadd.s32 127, %v468_v5 }
 0x11b   : > { %v374_v33 = vsel %vm291_vm0, %v373_v29, %v372_v24  ;;  %v467_v35 = vor.u32 %v466_v26, %v465_v30  ;;  %v470_v36 = vshll.u32 %v469_v31, 23 }
 0x11c   : > { %v377_v34 = vsel %vm884_vm1, %v828_v8, %v374_v33 }
 0x11d   : > { %702 = vcosq.f32 %v377_v34  ;;  %v471_v37 = vor.u32 4788187, %v470_v36  ;;  %v474_v40 = vcvt.s32.f32 %v467_v35 }
 0x11e   : > { %704 = vsinq.f32 %v377_v34 }
 0x11f   : > { %v472_v39 = vand.u32 2147483647, %v471_v37 }
 0x121   : > { %v475_v38 = vmul.f32 %v474_v40, %v472_v39 }
 0x123   : > { %v476_v41 = vxor.u32 2147483648, %v475_v38 }
 0x125   : > { %v477_v43 = vsel %vm394_vm2, %v476_v41, %v475_v38 }
 0x126   : > { %v480_v44 = vsel %vm897_vm3, %v834_v14, %v477_v43 }
 0x127   : > { %706 = vcosq.f32 %v480_v44 }
 0x128   : > { %708 = vsinq.f32 %v480_v44 }
 0x12a   : > { %v703_v48 = vpop.eup %702 }
 0x12b   : > { %v705_v21 = vpop.eup %704  ;;  %v388_v52 = vxor.u32 2147483648, %v703_v48 }
 0x12c   : > { %v385_v28 = vxor.u32 2147483648, %v705_v21 }
 0x12d   : > { %v389_v55 = vsel %vm387_vm5, %v388_v52, %v705_v21 }
 0x12e   : > { %v386_v54 = vsel %vm384_vm4, %v703_v48, %v385_v28 }
 0x12f   : > { %v390_v59 = vsel %vm383_vm6, %v386_v54, %v389_v55 }
 0x130   : > { %v391_v63 = vsel %vm381_vm8, nan, %v390_v59 }
 0x131   : > { %v507_v6 = vmul.f32 %v500_v57, %v391_v63 }
 0x134   : > { %v707_v46 = vpop.eup %706 }
 0x135   : > { %v709_v58 = vpop.eup %708  ;;  %v491_v60 = vxor.u32 2147483648, %v707_v46 }
 0x136   : > { %v488_v61 = vxor.u32 2147483648, %v709_v58 }
 0x137   : > { %v492_v62 = vsel %vm490_vm7, %v491_v60, %v709_v58 }
 0x138   : > { %v489_v0 = vsel %vm487_vm9, %v707_v46, %v488_v61 }
 0x139   : > { %v493_v1 = vsel %vm486_vm10, %v489_v0, %v492_v62 }
 0x13a   : > { %v494_v3 = vsel %vm484_vm11, nan, %v493_v1 }
 0x13b   : > { %v508_v7 = vmul.f32 %v505_v2, %v494_v3 }
 0x13d   : > { %v510_v11 = vadd.f32 %v508_v7, %v507_v6  ;;  %516 = sbr.rel (%p633_p6) target bundleno = 342 (0x156), region = 40 }
 0x13f   : > { %v511_v12 = vadd.f32 %v510_v11, %v509_v10 }
 0x141   : > { %512 = vst [vmem:[#allocation2] sm:$0xff] %v511_v12 }
 0x148   : > { %v517_v8 = vld [vmem:[#allocation2] sm:$0xff] }
 0x149   : > { %v518_v13 = vrot.slane %v517_v8, 4 }
 0x14b   : > { %v519_v15 = vadd.f32 %v518_v13, %v517_v8 }
 0x14d   : > { %v520_v16 = vrot.slane %v519_v15, 2 }
 0x14f   : > { %v521_v17 = vadd.f32 %v520_v16, %v519_v15 }
 0x151   : > { %v522_v18 = vrot.slane %v521_v17, 1 }
 0x153   : > { %v523_v19 = vadd.f32 %v522_v18, %v521_v17 }
 0x155   : > { %524 = vst [vmem:[#allocation3] sm:$0x1] %v523_v19 }
 0x156 PF: > { %p916_p7 = scmp.eq.s32.totalorder %s611_s15, 2  ;;  %s772_s4 = smov [#allocation3]  }
 0x157   : > { %s534_s5 = sshll.u32 %s772_s4, 4  ;;  %s535_s5 = int_to_ptr.vmem [resolvable:$true] %s534_s5 }
 0x158   : > { %s710_s6 = scalar_lea.vmem %s535_s5, 16  ;;  %s716_s7 = scalar_lea.vmem %s535_s5, 32 }
 0x159   : > { %p711_p8 = scmp.ne.s32.totalorder %s535_s5, %s710_s6  ;;  %p717_p11 = scmp.lt.s32.totalorder %s535_s5, %s535_s5 }
 0x15a   : > { %p718_p12 = scmp.lt.s32.totalorder %s716_s7, %s710_s6 }
 0x15b   : > { %p712_p9 = pnand %p711_p8, %p916_p7 }
 0x15c   : > { %p719_p13 = por %p718_p12, %p717_p11 }
 0x15d   : > { %p713_p10 = pneg %p712_p9 }
 0x15f   : > { %p720_p0 = pnand %p719_p13, %p713_p10 }
 0x161   : > { %723 = shalt.err (!%p720_p0)
}
 0x162   : > { %658 = dma.vmem_to_hbm [thread:$0]  (%p916_p7), %s535_s5, 16, %s943_s3, [#allocation4]  }
 0x163   : > { %747 = dma.done.wait (%p916_p7), [#allocation4], 16  }
 0x164   : > { %749 = vsyncadd (%p916_p7), [#allocation4], 4294967280 }
 0x165 PF: > { %s14_s14 = sadd.s32 1, %s760_s14   ;;  %s949_s12 = smov %s756_s13 }
 0x166   : > { %p11_p1 = scmp.ge.s32.totalorder %s14_s14, 5   ;;  %s950_s13 = smov %s952_s16 }
 0x168   :  { %13 = sbr.rel (!%p11_p1) target bundleno = 2 (0x2), region = 74 }
 0x16d   :  { %547 = vsyncpa [#allocation4], 1 }
 0x16e   :  { %549 = vsyncpa [#allocation4 + $0x1], 1 }

</bundles_post_ra>
